<compile_context>
chip_gen: v7x
topology: tpu7x:2x2x1
jax: 0.10.0
libtpu: 0.0.40
codegen_flags: <defaults>
</compile_context>

<pallas_src>
import jax
import jax.numpy as jnp
from jax.experimental import pallas as pl
from jax.experimental.pallas import tpu as pltpu


def _round_up(n: int, m: int) -> int:
    return ((n + m - 1) // m) * m


def qnet_kernel(x_ref, w1_ref, b1_ref, w2_ref, b2_ref, wh_ref, bh_ref, heads_ref):
    # Layer 1: Linear(G*4, G*H) + ReLU  (block-diag packed, MXU, f32 accumulate).
    h1 = jnp.dot(x_ref[...], w1_ref[...], preferred_element_type=jnp.float32) + b1_ref[...]
    h1 = jnp.maximum(h1, 0.0)
    # Layer 2: Linear(G*H, G*H) + ReLU.
    h2 = jnp.dot(h1, w2_ref[...], preferred_element_type=jnp.float32) + b2_ref[...]
    h2 = jnp.maximum(h2, 0.0)
    # Fused dueling heads: per packed group g,
    #   heads[:, g*(A+1) : g*(A+1)+A] = Advantage + Value   ("+Value" baked into wh)
    #   heads[:, g*(A+1)+A]           = Value                (for the batch mean)
    heads_ref[...] = (
        jnp.dot(h2, wh_ref[...], preferred_element_type=jnp.float32) + bh_ref[...]
    )


def pack_params(params, h_size: int, n_actions: int, g_pack: int):
    """One-time weight prep (outside pallas_call).

    1) Fuse the two dueling heads into one (h_size, A+1) weight with the
       '+ Value' broadcast baked in:
         cols [0:A]: rows[:H/2] = wa, rows[H/2:] = wv tiled A times  -> Adv + Val
         col  [A]  : rows[H/2:] = wv                                 -> Val
    2) Block-diag-replicate every weight G times (lane packing of G batch rows).
    """
    A = n_actions
    half = h_size // 2
    wa, ba = params["wa"], params["ba"]
    wv, bv = params["wv"], params["bv"]

    w_heads = jnp.zeros((h_size, A + 1), jnp.float32)
    w_heads = w_heads.at[:half, :A].set(wa)
    w_heads = w_heads.at[half:, :A].set(jnp.tile(wv, (1, A)))  # "+ Value" baked in
    w_heads = w_heads.at[half:, A:].set(wv)
    b_heads = jnp.concatenate([ba + bv, bv], axis=1)            # (1, A+1)

    def blockdiag(w):  # G block-diagonal copies
        return jnp.kron(jnp.eye(g_pack, dtype=w.dtype), w)

    def tile_bias(b):
        return jnp.tile(b, (1, g_pack))

    return {
        "w1": blockdiag(params["w1"]), "b1": tile_bias(params["b1"]),
        "w2": blockdiag(params["w2"]), "b2": tile_bias(params["b2"]),
        "wh": blockdiag(w_heads),      "bh": tile_bias(b_heads),
        "g_pack": g_pack, "n_actions": A,
    }


def qnetwork_forward(x, packed, h_size: int, n_actions: int, g_pack: int,
                     block_rows: int = 1024):
    """x: (B, 4) float32. Returns (B, n_actions) = Advantage + (Value - mean_B(Value))."""
    del h_size  # folded into the packed weights
    B, F = x.shape
    A = n_actions
    G = g_pack
    gf = packed["w1"].shape[0]          # G * 4
    gh = packed["w2"].shape[0]          # G * h_size
    go = packed["wh"].shape[1]          # G * (A + 1)
    assert gf == G * F

    # --- Pack G batch rows per vreg row; pad batch so the grid tiles evenly. ---
    rows = -(-B // G)                                  # packed rows needed
    tb = min(block_rows, _round_up(max(rows, 1), 8))   # block rows (multiple of 8)
    rows_pad = _round_up(rows, tb)
    b_pad = rows_pad * G
    x_pad = jnp.pad(x, ((0, b_pad - B), (0, 0)))
    x_packed = x_pad.reshape(rows_pad, G * F)

    grid = (rows_pad // tb,)
    resident = lambda i: (0, 0)   # weights stay VMEM-resident across the batch grid

    heads_packed = pl.pallas_call(
        qnet_kernel,
        out_shape=jax.ShapeDtypeStruct((rows_pad, go), jnp.float32),
        grid=grid,
        in_specs=[
            pl.BlockSpec((tb, gf), lambda i: (i, 0)),   # x: streamed per block
            pl.BlockSpec((gf, gh), resident),           # w1 (block-diag packed)
            pl.BlockSpec((1, gh), resident),            # b1
            pl.BlockSpec((gh, gh), resident),           # w2
            pl.BlockSpec((1, gh), resident),            # b2
            pl.BlockSpec((gh, go), resident),           # fused heads weight
            pl.BlockSpec((1, go), resident),            # fused heads bias
        ],
        out_specs=pl.BlockSpec((tb, go), lambda i: (i, 0)),
        compiler_params=pltpu.CompilerParams(
            dimension_semantics=("parallel",),           # megacore-shardable on v7x
        ),
    )(x_packed, packed["w1"], packed["b1"], packed["w2"], packed["b2"],
      packed["wh"], packed["bh"])

    # --- Tiny XLA epilogue: unpack + global batch-mean subtraction. ---
    heads = heads_packed.reshape(b_pad, A + 1)[:B]      # drop padded rows
    adv_plus_val = heads[:, :A]                          # Advantage + Value
    val = heads[:, A:A + 1]                              # Value
    return adv_plus_val - jnp.mean(val, axis=0, keepdims=True)


def init_params(key, h_size: int, action_space_n: int):
    """Deterministic synthetic parameters (shapes match the PyTorch module,
    weights stored transposed: (in_features, out_features))."""
    ks = jax.random.split(key, 8)
    half = h_size // 2

    def lin(kw, kb, fan_in, fan_out):
        bound = 1.0 / jnp.sqrt(fan_in)
        w = jax.random.uniform(kw, (fan_in, fan_out), jnp.float32, -bound, bound)
        b = jax.random.uniform(kb, (1, fan_out), jnp.float32, -bound, bound)
        return w, b

    w1, b1 = lin(ks[0], ks[1], 4, h_size)
    w2, b2 = lin(ks[2], ks[3], h_size, h_size)
    wa, ba = lin(ks[4], ks[5], half, action_space_n)
    wv, bv = lin(ks[6], ks[7], half, 1)
    return {"w1": w1, "b1": b1, "w2": w2, "b2": b2,
            "wa": wa, "ba": ba, "wv": wv, "bv": bv}


def reference_forward(x, p, h_size):
    """Pure-JAX reference mirroring the PyTorch forward."""
    half = h_size // 2
    h = jnp.maximum(x @ p["w1"] + p["b1"], 0.0)
    h = jnp.maximum(h @ p["w2"] + p["b2"], 0.0)
    adv = h[:, :half] @ p["wa"] + p["ba"]
    val = h[:, half:h_size] @ p["wv"] + p["bv"]
    v_af = val - jnp.mean(val, axis=0, keepdims=True)
    return v_af + adv


if __name__ == "__main__":
    B = 8                 # batch
    H_SIZE = 32           # h_size
    N_ACTIONS = 4         # action_space_n

    key = jax.random.PRNGKey(0)
    kx, kp = jax.random.split(key)
    x = jax.random.normal(kx, (B, 4), dtype=jnp.float32)

    params = init_params(kp, H_SIZE, N_ACTIONS)
    G = max(1, 128 // H_SIZE)                      # fill the 128-lane vreg (G=4 for H=32)
    packed = pack_params(params, H_SIZE, N_ACTIONS, G)   # one-time weight prep

    out = qnetwork_forward(x, packed, H_SIZE, N_ACTIONS, G)
    out = jax.block_until_ready(out)

    ref = reference_forward(x, params, H_SIZE)
    assert out.shape == (B, N_ACTIONS)
    assert jnp.allclose(out, ref, atol=1e-4, rtol=1e-4), (
        f"max abs err = {jnp.max(jnp.abs(out - ref))}")

    print("KERNEL_OK")
</pallas_src>

<mosaic_0001>
module attributes {stable_mosaic.version = 11 : i64} {
  func.func @qnet_kernel(%arg0: i32, %arg1: memref<8x16xf32, #tpu.memory_space<vmem>>, %arg2: memref<16x128xf32, #tpu.memory_space<vmem>>, %arg3: memref<1x128xf32, #tpu.memory_space<vmem>>, %arg4: memref<128x128xf32, #tpu.memory_space<vmem>>, %arg5: memref<1x128xf32, #tpu.memory_space<vmem>>, %arg6: memref<128x20xf32, #tpu.memory_space<vmem>>, %arg7: memref<1x20xf32, #tpu.memory_space<vmem>>, %arg8: memref<8x20xf32, #tpu.memory_space<vmem>>) attributes {dimension_semantics = [#tpu.dimension_semantics<parallel>], iteration_bounds = array<i64: 1>, scalar_prefetch = 0 : i64, scratch_operands = 0 : i64, tpu.core_type = #tpu.core_type<tc>, window_params = [{transform_indices = @transform_0, window_bounds = array<i64: 8, 16>}, {pipeline_mode = #tpu.pipeline_mode<synchronous>, transform_indices = @transform_1, window_bounds = array<i64: 16, 128>}, {pipeline_mode = #tpu.pipeline_mode<synchronous>, transform_indices = @transform_2, window_bounds = array<i64: 1, 128>}, {pipeline_mode = #tpu.pipeline_mode<synchronous>, transform_indices = @transform_3, window_bounds = array<i64: 128, 128>}, {pipeline_mode = #tpu.pipeline_mode<synchronous>, transform_indices = @transform_4, window_bounds = array<i64: 1, 128>}, {pipeline_mode = #tpu.pipeline_mode<synchronous>, transform_indices = @transform_5, window_bounds = array<i64: 128, 20>}, {pipeline_mode = #tpu.pipeline_mode<synchronous>, transform_indices = @transform_6, window_bounds = array<i64: 1, 20>}, {transform_indices = @transform_7, window_bounds = array<i64: 8, 20>}]} {
    %c0 = arith.constant 0 : index
    %c0_0 = arith.constant 0 : index
    %0 = vector.load %arg1[%c0, %c0_0] : memref<8x16xf32, #tpu.memory_space<vmem>>, vector<8x16xf32>
    %c0_1 = arith.constant 0 : index
    %c0_2 = arith.constant 0 : index
    %1 = vector.load %arg2[%c0_1, %c0_2] : memref<16x128xf32, #tpu.memory_space<vmem>>, vector<16x128xf32>
    %cst = arith.constant dense<0.000000e+00> : vector<8x128xf32>
    %2 = tpu.matmul %0, %1, %cst {dimension_numbers = #tpu.dot_dimension_numbers<[1], [0], [0], [1], [0, 0, 1, 1], [], []>} : vector<8x16xf32>, vector<16x128xf32>, vector<8x128xf32> -> vector<8x128xf32>
    %c0_3 = arith.constant 0 : index
    %c0_4 = arith.constant 0 : index
    %3 = vector.load %arg3[%c0_3, %c0_4] : memref<1x128xf32, #tpu.memory_space<vmem>>, vector<1x128xf32>
    %4 = vector.broadcast %3 : vector<1x128xf32> to vector<8x128xf32>
    %5 = arith.addf %2, %4 : vector<8x128xf32>
    %cst_5 = arith.constant 0.000000e+00 : f32
    %6 = vector.broadcast %cst_5 : f32 to vector<8x128xf32>
    %7 = arith.maximumf %5, %6 : vector<8x128xf32>
    %c0_6 = arith.constant 0 : index
    %c0_7 = arith.constant 0 : index
    %8 = vector.load %arg4[%c0_6, %c0_7] : memref<128x128xf32, #tpu.memory_space<vmem>>, vector<128x128xf32>
    %cst_8 = arith.constant dense<0.000000e+00> : vector<8x128xf32>
    %9 = tpu.matmul %7, %8, %cst_8 {dimension_numbers = #tpu.dot_dimension_numbers<[1], [0], [0], [1], [0, 0, 1, 1], [], []>} : vector<8x128xf32>, vector<128x128xf32>, vector<8x128xf32> -> vector<8x128xf32>
    %c0_9 = arith.constant 0 : index
    %c0_10 = arith.constant 0 : index
    %10 = vector.load %arg5[%c0_9, %c0_10] : memref<1x128xf32, #tpu.memory_space<vmem>>, vector<1x128xf32>
    %11 = vector.broadcast %10 : vector<1x128xf32> to vector<8x128xf32>
    %12 = arith.addf %9, %11 : vector<8x128xf32>
    %cst_11 = arith.constant 0.000000e+00 : f32
    %13 = vector.broadcast %cst_11 : f32 to vector<8x128xf32>
    %14 = arith.maximumf %12, %13 : vector<8x128xf32>
    %c0_12 = arith.constant 0 : index
    %c0_13 = arith.constant 0 : index
    %15 = vector.load %arg6[%c0_12, %c0_13] : memref<128x20xf32, #tpu.memory_space<vmem>>, vector<128x20xf32>
    %cst_14 = arith.constant dense<0.000000e+00> : vector<8x20xf32>
    %16 = tpu.matmul %14, %15, %cst_14 {dimension_numbers = #tpu.dot_dimension_numbers<[1], [0], [0], [1], [0, 0, 1, 1], [], []>} : vector<8x128xf32>, vector<128x20xf32>, vector<8x20xf32> -> vector<8x20xf32>
    %c0_15 = arith.constant 0 : index
    %c0_16 = arith.constant 0 : index
    %17 = vector.load %arg7[%c0_15, %c0_16] : memref<1x20xf32, #tpu.memory_space<vmem>>, vector<1x20xf32>
    %18 = vector.broadcast %17 : vector<1x20xf32> to vector<8x20xf32>
    %19 = arith.addf %16, %18 : vector<8x20xf32>
    %c0_17 = arith.constant 0 : index
    %c0_18 = arith.constant 0 : index
    %20 = vector.load %arg8[%c0_17, %c0_18] : memref<8x20xf32, #tpu.memory_space<vmem>>, vector<8x20xf32>
    tpu.vector_store %arg8[%c0_17, %c0_18], %19 {strides = array<i32>} : memref<8x20xf32, #tpu.memory_space<vmem>>, vector<8x20xf32>,
    return
  }
  func.func @transform_0(%arg0: i32) -> (i32, i32) {
    %c0_i32 = arith.constant 0 : i32
    %c0_i32_0 = arith.constant 0 : i32
    return %arg0, %c0_i32 : i32, i32
  }
  func.func @transform_1(%arg0: i32) -> (i32, i32) {
    %c0_i32 = arith.constant 0 : i32
    %c0_i32_0 = arith.constant 0 : i32
    %c0_i32_1 = arith.constant 0 : i32
    return %c0_i32, %c0_i32_0 : i32, i32
  }
  func.func @transform_2(%arg0: i32) -> (i32, i32) {
    %c0_i32 = arith.constant 0 : i32
    %c0_i32_0 = arith.constant 0 : i32
    %c0_i32_1 = arith.constant 0 : i32
    return %c0_i32, %c0_i32_0 : i32, i32
  }
  func.func @transform_3(%arg0: i32) -> (i32, i32) {
    %c0_i32 = arith.constant 0 : i32
    %c0_i32_0 = arith.constant 0 : i32
    %c0_i32_1 = arith.constant 0 : i32
    return %c0_i32, %c0_i32_0 : i32, i32
  }
  func.func @transform_4(%arg0: i32) -> (i32, i32) {
    %c0_i32 = arith.constant 0 : i32
    %c0_i32_0 = arith.constant 0 : i32
    %c0_i32_1 = arith.constant 0 : i32
    return %c0_i32, %c0_i32_0 : i32, i32
  }
  func.func @transform_5(%arg0: i32) -> (i32, i32) {
    %c0_i32 = arith.constant 0 : i32
    %c0_i32_0 = arith.constant 0 : i32
    %c0_i32_1 = arith.constant 0 : i32
    return %c0_i32, %c0_i32_0 : i32, i32
  }
  func.func @transform_6(%arg0: i32) -> (i32, i32) {
    %c0_i32 = arith.constant 0 : i32
    %c0_i32_0 = arith.constant 0 : i32
    %c0_i32_1 = arith.constant 0 : i32
    return %c0_i32, %c0_i32_0 : i32, i32
  }
  func.func @transform_7(%arg0: i32) -> (i32, i32) {
    %c0_i32 = arith.constant 0 : i32
    %c0_i32_0 = arith.constant 0 : i32
    return %arg0, %c0_i32 : i32, i32
  }
}

</mosaic_0001>

<bundles_post_ra>
// kernel: tpu_custom_call.1
= control target key start
LH: loop header
LB: loop body
LE: loop exit
PB: predicated region body
PF: predicated region fallthrough
CT: control target
= control target key end

     0   :  { %v512_v2 = vmov 0.0|0.0   ;;  %vm513_vm0 = vmmov 0   ;;  %v514_v4 = vmov 0.0   ;;  %vm37_vm1 = vcmask 130048   ;;  %s702_s0 = inlined_call_operand.vmem [shape: f32[8,16], index: 0, kind: input, shape index: {}]   ;;  %s703_s1 = inlined_call_operand.vmem [shape: f32[16,128], index: 1, kind: input, shape index: {}]   ;;  %s704_s2 = inlined_call_operand.vmem [shape: f32[1,128], index: 2, kind: input, shape index: {}]   ;;  %s705_s3 = inlined_call_operand.vmem [shape: f32[128,128], index: 3, kind: input, shape index: {}]   ;;  %s706_s4 = inlined_call_operand.vmem [shape: f32[1,128], index: 4, kind: input, shape index: {}]   ;;  %s707_s5 = inlined_call_operand.vmem [shape: f32[128,20], index: 5, kind: input, shape index: {}]   ;;  %s708_s6 = inlined_call_operand.vmem [shape: f32[1,20], index: 6, kind: input, shape index: {}]   ;;  %s709_s7 = inlined_call_operand.hbm [shape: f32[8,20], index: 7, kind: output, shape index: {}]  }
   0x1   :  { %v28_v0 = vld [vmem:[%s703_s1] sm:$0xff]  ;;  %v29_v1 = vld [vmem:[%s703_s1 + $0x8] sm:$0xff]  ;;  %433 = vmatprep.subr.bf16.mxu0 %v512_v2  ;;  %360 = vmatprep.mubr.msk.f32.mxu0 %vm513_vm0, %v514_v4  ;;  %v114_v7 = vld [vmem:[%s705_s3 + $0x10] sm:$0xff] }
   0x2   :  { %v434_v3 = vpack.c.bf16 %v29_v1, %v28_v0  ;;  %v112_v5 = vld [vmem:[%s705_s3] sm:$0xff]  ;;  %v113_v6 = vld [vmem:[%s705_s3 + $0x8] sm:$0xff]  ;;  %436 = vmatprep.subr.bf16.mxu1 %v512_v2  ;;  %v115_v9 = vld [vmem:[%s705_s3 + $0x18] sm:$0xff]  ;;  %395 = vmatprep.mubr.msk.f32.mxu1 %vm513_vm0, %v514_v4 }
   0x3   :  { %v437_v8 = vpack.c.bf16 %v113_v6, %v112_v5  ;;  %v27_v10 = vld [vmem:[%s702_s0] sm:$0xff]  ;;  %v440_v11 = vpack.c.bf16 %v115_v9, %v114_v7  ;;  %v117_v13 = vld [vmem:[%s705_s3 + $0x28] sm:$0xff] }
   0x4   :  { %435 = vmatpush3.bf16.msra.mxu0 %v434_v3  ;;  %v116_v12 = vld [vmem:[%s705_s3 + $0x20] sm:$0xff] }
   0x5   :  { %438 = vmatpush3.bf16.msra.mxu1 %v437_v8  ;;  %460 = vmatprep.subr.bf16.mxu0 %v512_v2 }
   0x6   :  { %439 = vmatprep.subr.bf16.mxu1 %v512_v2 }
   0x7   :  { %361 = vmatmul.mubr.msk.f32.vlgmr.msra.gmra.mrb[0].mxu0 %vm37_vm1, %v27_v10 }
   0x8   :  { %12 = vsyncpa [#allocation3], 0  ;;  %430 = vmatprep.mubr.msk.f32.mxu0 %vm513_vm0, %v514_v4  ;;  %v443_v14 = vpack.c.bf16 %v117_v13, %v116_v12  ;;  %v118_v15 = vld [vmem:[%s705_s3 + $0x30] sm:$0xff]  ;;  %v119_v16 = vld [vmem:[%s705_s3 + $0x38] sm:$0xff]  ;;  %s515_s22 = smov [#allocation2]   ;;  %vm299_vm2 = vcmask 162816  }
   0x9   :  { %441 = vmatpush3.bf16.msra.mxu1 %v440_v11  ;;  %v446_v17 = vpack.c.bf16 %v119_v16, %v118_v15  ;;  %v120_v18 = vld [vmem:[%s705_s3 + $0x40] sm:$0xff]  ;;  %v121_v19 = vld [vmem:[%s705_s3 + $0x48] sm:$0xff]  ;;  %v122_v21 = vld [vmem:[%s705_s3 + $0x50] sm:$0xff]  ;;  %s307_s23 = sshll.u32 %s515_s22, 4  ;;  %s308_s23 = int_to_ptr.vmem [resolvable:$true] %s307_s23 }
   0xa   :  { %442 = vmatprep.subr.bf16.mxu1 %v512_v2  ;;  %v449_v20 = vpack.c.bf16 %v121_v19, %v120_v18  ;;  %v123_v22 = vld [vmem:[%s705_s3 + $0x58] sm:$0xff]  ;;  %v124_v24 = vld [vmem:[%s705_s3 + $0x60] sm:$0xff]  ;;  %v125_v25 = vld [vmem:[%s705_s3 + $0x68] sm:$0xff]  ;;  %p493_p1 = scmp.lt.s32.totalorder %s308_s23, %s308_s23 }
   0xb   :  { %v452_v23 = vpack.c.bf16 %v123_v22, %v122_v21  ;;  %v455_v26 = vpack.c.bf16 %v125_v25, %v124_v24  ;;  %v126_v27 = vld [vmem:[%s705_s3 + $0x70] sm:$0xff]  ;;  %v127_v28 = vld [vmem:[%s705_s3 + $0x78] sm:$0xff]  ;;  %v206_v30 = vld [vmem:[%s707_s5] sm:$0xff] }
   0xc   :  { %v458_v29 = vpack.c.bf16 %v127_v28, %v126_v27  ;;  %v207_v31 = vld [vmem:[%s707_s5 + $0x8] sm:$0xff]  ;;  %v208_v32 = vld [vmem:[%s707_s5 + $0x10] sm:$0xff]  ;;  %v209_v34 = vld [vmem:[%s707_s5 + $0x18] sm:$0xff] }
   0xd   :  { %444 = vmatpush3.bf16.msra.mxu1 %v443_v14  ;;  %v461_v33 = vpack.c.bf16 %v207_v31, %v206_v30  ;;  %v464_v35 = vpack.c.bf16 %v209_v34, %v208_v32  ;;  %v210_v36 = vld [vmem:[%s707_s5 + $0x20] sm:$0xff]  ;;  %v211_v37 = vld [vmem:[%s707_s5 + $0x28] sm:$0xff]  ;;  %v212_v39 = vld [vmem:[%s707_s5 + $0x30] sm:$0xff] }
   0xe   :  { %445 = vmatprep.subr.bf16.mxu1 %v512_v2  ;;  %v467_v38 = vpack.c.bf16 %v211_v37, %v210_v36  ;;  %v213_v40 = vld [vmem:[%s707_s5 + $0x38] sm:$0xff]  ;;  %v214_v42 = vld [vmem:[%s707_s5 + $0x40] sm:$0xff]  ;;  %v215_v43 = vld [vmem:[%s707_s5 + $0x48] sm:$0xff] }
   0xf   :  { %462 = vmatpush3.bf16.msra.mxu0 %v461_v33  ;;  %v470_v41 = vpack.c.bf16 %v213_v40, %v212_v39  ;;  %v473_v44 = vpack.c.bf16 %v215_v43, %v214_v42  ;;  %v216_v45 = vld [vmem:[%s707_s5 + $0x50] sm:$0xff]  ;;  %v217_v46 = vld [vmem:[%s707_s5 + $0x58] sm:$0xff]  ;;  %v218_v48 = vld [vmem:[%s707_s5 + $0x60] sm:$0xff] }
  0x10   :  { %463 = vmatprep.subr.bf16.mxu0 %v512_v2  ;;  %v476_v47 = vpack.c.bf16 %v217_v46, %v216_v45  ;;  %v219_v49 = vld [vmem:[%s707_s5 + $0x68] sm:$0xff]  ;;  %v315_v51 = vld [vmem:[%s704_s2] ss:$0 sm:$0xff]  ;;  %v220_v56 = vld [vmem:[%s707_s5 + $0x70] sm:$0xff] }
  0x11   :  { %447 = vmatpush3.bf16.msra.mxu1 %v446_v17  ;;  %v479_v50 = vpack.c.bf16 %v219_v49, %v218_v48  ;;  %v221_v57 = vld [vmem:[%s707_s5 + $0x78] sm:$0xff]  ;;  %v317_v59 = vld [vmem:[%s706_s4] ss:$0 sm:$0xff]  ;;  %s488_s5 = scalar_lea.vmem %s308_s23, 128 }
  0x12   :  { %448 = vmatprep.subr.bf16.mxu1 %v512_v2  ;;  %v482_v58 = vpack.c.bf16 %v221_v57, %v220_v56  ;;  %v318_v0 = vld [vmem:[%s708_s6] ss:$0 sm:$0xff]  ;;  %p489_p0 = scmp.ne.s32.totalorder %s308_s23, %s488_s5  ;;  %p494_p2 = scmp.lt.s32.totalorder %s488_s5, %s488_s5 }
  0x13   :  { %465 = vmatpush3.bf16.msra.mxu0 %v464_v35 }
  0x14   :  { %466 = vmatprep.subr.bf16.mxu0 %v512_v2  ;;  %p495_p3 = por %p494_p2, %p493_p1 }
  0x15   :  { %450 = vmatpush3.bf16.msra.mxu1 %v449_v20 }
  0x16   :  { %451 = vmatprep.subr.bf16.mxu1 %v512_v2  ;;  %p496_p4 = pnand %p495_p3, %p489_p0 }
  0x17   :  { %468 = vmatpush3.bf16.msra.mxu0 %v467_v38 }
  0x18   :  { %469 = vmatprep.subr.bf16.mxu0 %v512_v2 }
  0x19   :  { %453 = vmatpush3.bf16.msra.mxu1 %v452_v23 }
  0x1a   :  { %454 = vmatprep.subr.bf16.mxu1 %v512_v2 }
  0x1b   :  { %471 = vmatpush3.bf16.msra.mxu0 %v470_v41 }
  0x1c   :  { %472 = vmatprep.subr.bf16.mxu0 %v512_v2 }
  0x1d   :  { %456 = vmatpush3.bf16.msra.mxu1 %v455_v26 }
  0x1e   :  { %457 = vmatprep.subr.bf16.mxu1 %v512_v2 }
  0x1f   :  { %474 = vmatpush3.bf16.msra.mxu0 %v473_v44 }
  0x20   :  { %475 = vmatprep.subr.bf16.mxu0 %v512_v2 }
  0x21   :  { %459 = vmatpush3.bf16.msra.mxu1 %v458_v29 }
  0x23   :  { %477 = vmatpush3.bf16.msra.mxu0 %v476_v47 }
  0x24   :  { %478 = vmatprep.subr.bf16.mxu0 %v512_v2 }
  0x27   :  { %480 = vmatpush3.bf16.msra.mxu0 %v479_v50 }
  0x28   :  { %481 = vmatprep.subr.bf16.mxu0 %v512_v2 }
  0x2b   :  { %483 = vmatpush3.bf16.msra.mxu0 %v482_v58 }
  0xda   :  { %v107_v52 = vpop.f32.mrb[0].mxu0 }
  0xdb   :  { %v108_v53 = vadd.f32 %v315_v51, %v107_v52  ;;  %v362_v54 = vpop.f32.mrb[1].mxu0 }
  0xdd   :  { %v111_v55 = vmax.f32 %v108_v53, 0.0 }
  0xdf   :  { %396 = vmatmul.mubr.f32.vlgmr.msra.gmra.mrb[0].mxu1 %v111_v55 }
 0x1b2   :  { %v201_v60 = vpop.f32.mrb[0].mxu1 }
 0x1b3   :  { %v202_v61 = vadd.f32 %v317_v59, %v201_v60  ;;  %v397_v62 = vpop.f32.mrb[1].mxu1 }
 0x1b5   :  { %v205_v63 = vmax.f32 %v202_v61, 0.0 }
 0x1b7   :  { %431 = vmatmul.mubr.f32.vlgmr.msra.gmra.mrb[2].mxu0 %v205_v63 }
 0x28a   :  { %v295_v1 = vpop.f32.mrb[2].mxu0 }
 0x28b   :  { %v296_v2 = vadd.f32 %v318_v0, %v295_v1  ;;  %v432_v3 = vpop.f32.mrb[3].mxu0 }
 0x28d   :  { %300 = vst.msk [vmem:[#allocation2] sm:$0xff] %vm299_vm2, %v296_v2 }
 0x28e   :  { %499 = shalt.err (!%p496_p4)
}
 0x28f   :  { %s500_s25 = scalar_lea.hbm %s709_s7, 128 }
 0x290   :  { %p501_p5 = scmp.ne.s32.totalorder %s709_s7, %s500_s25  ;;  %p504_p6 = scmp.lt.u32.totalorder %s500_s25, %s709_s7 }
 0x292   :  { %p506_p7 = pnand %p504_p6, %p501_p5 }
 0x294   :  { %509 = shalt.err (!%p506_p7)
}
 0x295   :  { %310 = dma.vmem_to_hbm [thread:$0]  %s308_s23, 128, %s709_s7, [#allocation3]  }
 0x296   :  { %510 = dma.done.wait [#allocation3], 128  }
 0x297   :  { %511 = vsyncadd [#allocation3], 4294967168 }
 0x298   :  { %314 = vsyncpa [#allocation3], 1 }

</bundles_post_ra>
